<compile_context>
chip_gen: v7x
topology: tpu7x:2x2x1
jax: 0.10.0
libtpu: 0.0.40
codegen_flags: <defaults>
</compile_context>

<pallas_src>
import functools
import jax
import jax.numpy as jnp
from jax import lax
from jax.experimental import pallas as pl
from jax.experimental.pallas import tpu as pltpu

IN_DIM = 192
DIM_MSA = 16
OUT_DIM = 12


# ---------------------------------------------------------------------------
# Pallas kernel: fused outer-product-mean + projection + bias add
# ---------------------------------------------------------------------------
def _opm_kernel(out_dim, dim_msa, compute_dtype,
                s_i_ref, s_j_ref, w2_ref, bias_ref, out_ref):
    # s_i_ref  : (1, TL, DM)        rows of this output tile (the "i" side)
    # s_j_ref  : (1, TC, DM)        columns of this output tile (the "j" side)
    # w2_ref   : (DM, OUT_DIM*DM)   W2mat[d, m*DM + c] = W2[c*DM + d, m]
    # bias_ref : (OUT_DIM, TL, TC)  proj_down2 bias + dynamic position bias tile
    # out_ref  : (1, OUT_DIM, TL, TC)
    tl = s_i_ref.shape[1]
    tc = s_j_ref.shape[1]

    s_i = s_i_ref[0]                                                     # (TL, DM)
    s_j = s_j_ref[0]                                                     # (TC, DM)

    # Stage 2: all OUT_DIM head projections in a single wide MXU dot:
    #   t[i, m*DM + c] = sum_d s_i[i, d] * W2[c*DM + d, m]
    t = jnp.dot(s_i, w2_ref[...], preferred_element_type=jnp.float32)    # (TL, OUT_DIM*DM)

    # Head-stack the per-head lane blocks into rows (register-level concat, no
    # VMEM scratch) so stage 3 is ONE long stacked MXU stream.
    t2 = jnp.concatenate(
        [t[:, m * dim_msa:(m + 1) * dim_msa] for m in range(out_dim)],
        axis=0)                                                          # (OUT_DIM*TL, DM)

    # Stage 3: stacked bilinear form.  Contract dim 1 of both operands so the
    # transpose of s_j is folded into the MXU operand fetch (no XLU transpose).
    res = lax.dot_general(
        t2.astype(compute_dtype), s_j,
        dimension_numbers=(((1,), (1,)), ((), ())),
        preferred_element_type=jnp.float32)                              # (OUT_DIM*TL, TC)

    # Single contiguous store of the whole (OUT_DIM, TL, TC) block, bias added in f32.
    out = res.reshape(out_dim, tl, tc) + bias_ref[...].astype(jnp.float32)
    out_ref[0] = out.astype(out_ref.dtype)


# ---------------------------------------------------------------------------
# DynamicPositionBias (tiny MLP on (2L-1, 1) inputs) -- plain JAX glue
# ---------------------------------------------------------------------------
def _silu(x):
    return x * jax.nn.sigmoid(x)


def dynamic_position_bias(n, params):
    pos = jnp.arange(-n + 1, n, dtype=jnp.float32)[:, None]             # (2n-1, 1)
    h = _silu(pos @ params["dp_w0"] + params["dp_b0"])                  # (2n-1, dim)
    h = _silu(h @ params["dp_w1"] + params["dp_b1"])                    # (2n-1, dim)
    h = h @ params["dp_w2"] + params["dp_b2"]                           # (2n-1, heads)
    idx = jnp.arange(n)[:, None] - jnp.arange(n)[None, :] + (n - 1)     # (n, n)
    bias = h[idx]                                                       # (n, n, heads)
    return jnp.transpose(bias, (2, 0, 1))                               # (heads, n, n)


# ---------------------------------------------------------------------------
# Tiling / VMEM helpers
# ---------------------------------------------------------------------------
def _choose_row_tile(L, want):
    if L <= want:
        return L
    for cand in (want, 512, 256, 128, 64, 32, 16, 8):
        if cand <= L and cand % 8 == 0 and L % cand == 0:
            return cand
    return L   # fallback: single tile covering all rows (full-dim block is legal)


def _choose_col_tile(L, want):
    if L <= want:
        return L
    for cand in (want, 2048, 1024, 512, 384, 256, 128):
        if cand <= L and cand % 128 == 0 and L % cand == 0:
            return cand
    return L   # fallback: full row of columns


def _round_up(x, m):
    return (x + m - 1) // m * m


def _block_vmem_bytes(shape, dtype):
    # Conservative VMEM footprint of one block (lane pad to 128, sublane pad to 8).
    dims = list(shape)
    dims[-1] = _round_up(max(dims[-1], 1), 128)
    if len(dims) >= 2:
        dims[-2] = _round_up(max(dims[-2], 1), 8)
    n = 1
    for d in dims:
        n *= d
    return n * jnp.dtype(dtype).itemsize


# ---------------------------------------------------------------------------
# Wrapper
# ---------------------------------------------------------------------------
def outer_product_mean_pallas(seq_rep, params, *, row_block=128, col_block=512,
                              use_bf16=True, out_dtype=None, vmem_limit_bytes=None):
    B, L, in_dim = seq_rep.shape
    w1, b1 = params["w1"], params["b1"]                 # (in_dim, dm), (dm,)
    w2, b2 = params["w2"], params["b2"]                 # (dm*dm, out_dim), (out_dim,)
    dim_msa = w1.shape[1]
    out_dim = w2.shape[1]

    compute_dtype = jnp.bfloat16 if use_bf16 else jnp.float32
    if out_dtype is None:
        out_dtype = jnp.bfloat16 if use_bf16 else jnp.float32
    bias_dtype = jnp.bfloat16 if use_bf16 else jnp.float32

    # Stage 1 (proj_down1) once in plain XLA: tiny work, and feeding s (B, L, DM)
    # to the kernel shrinks the i/j-side DMA by in_dim/dm = 12x and removes the
    # per-row-tile recompute of the full-sequence projection.
    s = (seq_rep.astype(jnp.float32) @ w1.astype(jnp.float32)
         + b1.astype(jnp.float32))                                      # (B, L, DM)
    s_c = s.astype(compute_dtype)

    # W2[c*DM + d, m]  ->  W2mat[d, m*DM + c]   (all heads stacked along lanes)
    w2r = w2.reshape(dim_msa, dim_msa, out_dim)                         # [c, d, m]
    w2mat = jnp.transpose(w2r, (1, 2, 0)).reshape(dim_msa, out_dim * dim_msa)
    w2mat_c = w2mat.astype(compute_dtype)

    # proj_down2 bias + dynamic position bias, combined once; stored narrow on the
    # fast path since it is the second-largest HBM stream.
    # TODO(synk): build this tile in-kernel from the (2L-1, OUT_DIM) dyn-pos table
    # (banded/Toeplitz gather) to avoid materializing an O(L^2) bias array in HBM.
    bias_total = (dynamic_position_bias(L, params)
                  + b2[:, None, None]).astype(bias_dtype)               # (out_dim, L, L)

    tl = _choose_row_tile(L, row_block)
    tc = _choose_col_tile(L, col_block)
    n_r, n_c = L // tl, L // tc

    # Advisory cost estimate: this custom call is bandwidth-dominated.
    c_bytes = jnp.dtype(compute_dtype).itemsize
    o_bytes = jnp.dtype(out_dtype).itemsize
    bi_bytes = jnp.dtype(bias_dtype).itemsize
    flops = (2 * B * out_dim * L * L * dim_msa                          # stage 3
             + 2 * B * n_c * L * dim_msa * out_dim * dim_msa)           # stage 2
    bytes_accessed = (B * out_dim * L * L * o_bytes                     # output write
                      + out_dim * L * L * bi_bytes                      # bias read
                      + B * L * dim_msa * c_bytes * (n_r + n_c)         # s reads
                      + dim_msa * out_dim * dim_msa * c_bytes)          # W2mat
    cost = pl.CostEstimate(flops=flops, transcendentals=0,
                           bytes_accessed=bytes_accessed)

    if vmem_limit_bytes is None:
        block_bytes = (
            _block_vmem_bytes((1, tl, dim_msa), compute_dtype)
            + _block_vmem_bytes((1, tc, dim_msa), compute_dtype)
            + _block_vmem_bytes((dim_msa, out_dim * dim_msa), compute_dtype)
            + _block_vmem_bytes((out_dim, tl, tc), bias_dtype)
            + _block_vmem_bytes((1, out_dim, tl, tc), out_dtype))
        # double-buffered blocks + headroom; explicit so v5e's 16 MiB scoped
        # default never becomes the binding constraint.
        vmem_limit_bytes = max(int(2 * block_bytes * 1.4) + (2 << 20), 24 << 20)

    kernel = functools.partial(_opm_kernel, out_dim, dim_msa, compute_dtype)
    out = pl.pallas_call(
        kernel,
        out_shape=jax.ShapeDtypeStruct((B, out_dim, L, L), out_dtype),
        # Grid order (rows, cols, batch): batch innermost keeps the bias tile
        # resident across the batch loop (only re-fetched when (r, c) changes);
        # the two leading "parallel" axes feed v7x's two TensorCores even when B=1.
        grid=(n_r, n_c, B),
        in_specs=[
            pl.BlockSpec((1, tl, dim_msa), lambda r, c, b: (b, r, 0)),          # s rows (i)
            pl.BlockSpec((1, tc, dim_msa), lambda r, c, b: (b, c, 0)),          # s cols (j)
            pl.BlockSpec((dim_msa, out_dim * dim_msa), lambda r, c, b: (0, 0)),  # W2mat
            pl.BlockSpec((out_dim, tl, tc), lambda r, c, b: (0, r, c)),         # bias tile
        ],
        out_specs=pl.BlockSpec((1, out_dim, tl, tc), lambda r, c, b: (b, 0, r, c)),
        compiler_params=pltpu.CompilerParams(
            dimension_semantics=("parallel", "parallel", "arbitrary"),
            vmem_limit_bytes=vmem_limit_bytes),
        cost_estimate=cost,
    )(s_c, s_c, w2mat_c, bias_total)
    return out


# ---------------------------------------------------------------------------
# Pure-JAX reference (mirrors the PyTorch forward exactly)
# ---------------------------------------------------------------------------
def outer_product_mean_ref(seq_rep, params):
    s = seq_rep @ params["w1"] + params["b1"]                           # (B, L, dm)
    B, L, dm = s.shape
    op = jnp.einsum("bid,bjc->bijcd", s, s)                             # (B, L, L, dm, dm)
    opf = op.reshape(B, L, L, dm * dm)                                  # flatten (c d): c outer
    out = opf @ params["w2"] + params["b2"]                             # (B, L, L, out_dim)
    out = jnp.transpose(out, (0, 3, 1, 2))                              # (B, out_dim, L, L)
    return out + dynamic_position_bias(L, params)[None]


# ---------------------------------------------------------------------------
# Deterministic parameter init (PyTorch Linear-style uniform bounds)
# ---------------------------------------------------------------------------
def init_params(key, in_dim=IN_DIM, dim_msa=DIM_MSA, out_dim=OUT_DIM):
    dp_dim = in_dim // 4

    def lin(k, fan_in, fan_out):
        kw, kb = jax.random.split(k)
        bound = 1.0 / (fan_in ** 0.5)
        w = jax.random.uniform(kw, (fan_in, fan_out), jnp.float32, -bound, bound)
        b = jax.random.uniform(kb, (fan_out,), jnp.float32, -bound, bound)
        return w, b

    keys = jax.random.split(key, 5)
    w1, b1 = lin(keys[0], in_dim, dim_msa)
    w2, b2 = lin(keys[1], dim_msa * dim_msa, out_dim)
    dp_w0, dp_b0 = lin(keys[2], 1, dp_dim)
    dp_w1, dp_b1 = lin(keys[3], dp_dim, dp_dim)
    dp_w2, dp_b2 = lin(keys[4], dp_dim, out_dim)
    return dict(
        w1=w1, b1=b1, w2=w2, b2=b2,
        dp_w0=dp_w0, dp_b0=dp_b0,
        dp_w1=dp_w1, dp_b1=dp_b1,
        dp_w2=dp_w2, dp_b2=dp_b2,
    )


if __name__ == "__main__":
    key = jax.random.PRNGKey(0)
    k_params, k_x = jax.random.split(key)
    params = init_params(k_params)

    B, L = 2, 8
    seq_rep = jax.random.normal(k_x, (B, L, IN_DIM), dtype=jnp.float32)

    ref = outer_product_mean_ref(seq_rep, params)

    # Exact f32-MXU path (f32 operands, bias and output).
    out_f32 = jax.block_until_ready(
        outer_product_mean_pallas(seq_rep, params, use_bf16=False))
    assert out_f32.shape == (B, OUT_DIM, L, L), out_f32.shape
    assert out_f32.dtype == jnp.float32
    if not bool(jnp.allclose(out_f32, ref, atol=1e-4, rtol=1e-4)):
        raise AssertionError("Pallas kernel (f32) does not match reference")

    # Fast path: bf16 operands / bias / output, f32 MXU accumulation.
    out_fast = jax.block_until_ready(
        outer_product_mean_pallas(seq_rep, params, use_bf16=True))
    assert out_fast.shape == (B, OUT_DIM, L, L), out_fast.shape
    assert out_fast.dtype == jnp.bfloat16
    if not bool(jnp.allclose(out_fast.astype(jnp.float32), ref, atol=5e-2, rtol=5e-2)):
        raise AssertionError("Pallas kernel (bf16 fast path) does not match reference")

    print("KERNEL_OK")
</pallas_src>

<mosaic_0001>
module attributes {stable_mosaic.version = 11 : i64} {
  func.func @_opm_kernel(%arg0: i32, %arg1: i32, %arg2: i32, %arg3: memref<1x8x16xf32, #tpu.memory_space<vmem>>, %arg4: memref<1x8x16xf32, #tpu.memory_space<vmem>>, %arg5: memref<16x192xf32, #tpu.memory_space<vmem>>, %arg6: memref<12x8x8xf32, #tpu.memory_space<vmem>>, %arg7: memref<1x12x8x8xf32, #tpu.memory_space<vmem>>) attributes {dimension_semantics = [#tpu.dimension_semantics<parallel>, #tpu.dimension_semantics<parallel>, #tpu.dimension_semantics<arbitrary>], iteration_bounds = array<i64: 1, 1, 2>, scalar_prefetch = 0 : i64, scratch_operands = 0 : i64, tpu.core_type = #tpu.core_type<tc>, window_params = [{transform_indices = @transform_0, window_bounds = array<i64: 1, 8, 16>}, {transform_indices = @transform_1, window_bounds = array<i64: 1, 8, 16>}, {pipeline_mode = #tpu.pipeline_mode<synchronous>, transform_indices = @transform_2, window_bounds = array<i64: 16, 192>}, {transform_indices = @transform_3, window_bounds = array<i64: 12, 8, 8>}, {transform_indices = @transform_4, window_bounds = array<i64: 1, 12, 8, 8>}]} {
    %c0 = arith.constant 0 : index
    %c0_0 = arith.constant 0 : index
    %c0_1 = arith.constant 0 : index
    %0 = vector.load %arg3[%c0, %c0_0, %c0_1] : memref<1x8x16xf32, #tpu.memory_space<vmem>>, vector<1x8x16xf32>
    %1 = vector.shape_cast %0 : vector<1x8x16xf32> to vector<8x16xf32>
    %c0_2 = arith.constant 0 : index
    %c0_3 = arith.constant 0 : index
    %c0_4 = arith.constant 0 : index
    %2 = vector.load %arg4[%c0_2, %c0_3, %c0_4] : memref<1x8x16xf32, #tpu.memory_space<vmem>>, vector<1x8x16xf32>
    %3 = vector.shape_cast %2 : vector<1x8x16xf32> to vector<8x16xf32>
    %c0_5 = arith.constant 0 : index
    %c0_6 = arith.constant 0 : index
    %4 = vector.load %arg5[%c0_5, %c0_6] : memref<16x192xf32, #tpu.memory_space<vmem>>, vector<16x192xf32>
    %cst = arith.constant dense<0.000000e+00> : vector<8x192xf32>
    %5 = tpu.matmul %1, %4, %cst {dimension_numbers = #tpu.dot_dimension_numbers<[1], [0], [0], [1], [0, 0, 1, 1], [], []>} : vector<8x16xf32>, vector<16x192xf32>, vector<8x192xf32> -> vector<8x192xf32>
    %6 = vector.extract_strided_slice %5 {offsets = [0, 0], sizes = [8, 16], strides = [1, 1]} : vector<8x192xf32> to vector<8x16xf32>
    %7 = vector.extract_strided_slice %5 {offsets = [0, 16], sizes = [8, 16], strides = [1, 1]} : vector<8x192xf32> to vector<8x16xf32>
    %8 = vector.extract_strided_slice %5 {offsets = [0, 32], sizes = [8, 16], strides = [1, 1]} : vector<8x192xf32> to vector<8x16xf32>
    %9 = vector.extract_strided_slice %5 {offsets = [0, 48], sizes = [8, 16], strides = [1, 1]} : vector<8x192xf32> to vector<8x16xf32>
    %10 = vector.extract_strided_slice %5 {offsets = [0, 64], sizes = [8, 16], strides = [1, 1]} : vector<8x192xf32> to vector<8x16xf32>
    %11 = vector.extract_strided_slice %5 {offsets = [0, 80], sizes = [8, 16], strides = [1, 1]} : vector<8x192xf32> to vector<8x16xf32>
    %12 = vector.extract_strided_slice %5 {offsets = [0, 96], sizes = [8, 16], strides = [1, 1]} : vector<8x192xf32> to vector<8x16xf32>
    %13 = vector.extract_strided_slice %5 {offsets = [0, 112], sizes = [8, 16], strides = [1, 1]} : vector<8x192xf32> to vector<8x16xf32>
    %14 = vector.extract_strided_slice %5 {offsets = [0, 128], sizes = [8, 16], strides = [1, 1]} : vector<8x192xf32> to vector<8x16xf32>
    %15 = vector.extract_strided_slice %5 {offsets = [0, 144], sizes = [8, 16], strides = [1, 1]} : vector<8x192xf32> to vector<8x16xf32>
    %16 = vector.extract_strided_slice %5 {offsets = [0, 160], sizes = [8, 16], strides = [1, 1]} : vector<8x192xf32> to vector<8x16xf32>
    %17 = vector.extract_strided_slice %5 {offsets = [0, 176], sizes = [8, 16], strides = [1, 1]} : vector<8x192xf32> to vector<8x16xf32>
    %18 = tpu.concatenate %6, %7, %8, %9, %10, %11, %12, %13, %14, %15, %16, %17 in 0 : vector<8x16xf32>, vector<8x16xf32>, vector<8x16xf32>, vector<8x16xf32>, vector<8x16xf32>, vector<8x16xf32>, vector<8x16xf32>, vector<8x16xf32>, vector<8x16xf32>, vector<8x16xf32>, vector<8x16xf32>, vector<8x16xf32> -> vector<96x16xf32>
    %cst_7 = arith.constant dense<0.000000e+00> : vector<96x8xf32>
    %19 = tpu.matmul %18, %3, %cst_7 {dimension_numbers = #tpu.dot_dimension_numbers<[1], [1], [0], [0], [0, 0, 1, 0], [], []>} : vector<96x16xf32>, vector<8x16xf32>, vector<96x8xf32> -> vector<96x8xf32>
    %20 = vector.shape_cast %19 : vector<96x8xf32> to vector<12x8x8xf32>
    %c0_8 = arith.constant 0 : index
    %c0_9 = arith.constant 0 : index
    %c0_10 = arith.constant 0 : index
    %21 = vector.load %arg6[%c0_8, %c0_9, %c0_10] : memref<12x8x8xf32, #tpu.memory_space<vmem>>, vector<12x8x8xf32>
    %22 = arith.addf %20, %21 : vector<12x8x8xf32>
    %c0_11 = arith.constant 0 : index
    %c0_12 = arith.constant 0 : index
    %c0_13 = arith.constant 0 : index
    %c0_14 = arith.constant 0 : index
    %23 = vector.load %arg7[%c0_11, %c0_12, %c0_13, %c0_14] : memref<1x12x8x8xf32, #tpu.memory_space<vmem>>, vector<1x12x8x8xf32>
    %24 = vector.shape_cast %23 : vector<1x12x8x8xf32> to vector<12x8x8xf32>
    %25 = vector.shape_cast %22 : vector<12x8x8xf32> to vector<1x12x8x8xf32>
    tpu.vector_store %arg7[%c0_11, %c0_12, %c0_13, %c0_14], %25 {strides = array<i32>} : memref<1x12x8x8xf32, #tpu.memory_space<vmem>>, vector<1x12x8x8xf32>,
    return
  }
  func.func @transform_0(%arg0: i32, %arg1: i32, %arg2: i32) -> (i32, i32, i32) {
    %c0_i32 = arith.constant 0 : i32
    %c0_i32_0 = arith.constant 0 : i32
    return %arg2, %arg0, %c0_i32 : i32, i32, i32
  }
  func.func @transform_1(%arg0: i32, %arg1: i32, %arg2: i32) -> (i32, i32, i32) {
    %c0_i32 = arith.constant 0 : i32
    %c0_i32_0 = arith.constant 0 : i32
    return %arg2, %arg1, %c0_i32 : i32, i32, i32
  }
  func.func @transform_2(%arg0: i32, %arg1: i32, %arg2: i32) -> (i32, i32) {
    %c0_i32 = arith.constant 0 : i32
    %c0_i32_0 = arith.constant 0 : i32
    %c0_i32_1 = arith.constant 0 : i32
    return %c0_i32, %c0_i32_0 : i32, i32
  }
  func.func @transform_3(%arg0: i32, %arg1: i32, %arg2: i32) -> (i32, i32, i32) {
    %c0_i32 = arith.constant 0 : i32
    %c0_i32_0 = arith.constant 0 : i32
    return %c0_i32, %arg0, %arg1 : i32, i32, i32
  }
  func.func @transform_4(%arg0: i32, %arg1: i32, %arg2: i32) -> (i32, i32, i32, i32) {
    %c0_i32 = arith.constant 0 : i32
    %c0_i32_0 = arith.constant 0 : i32
    return %arg2, %c0_i32, %arg0, %arg1 : i32, i32, i32, i32
  }
}

</mosaic_0001>

<bundles_post_ra>
// kernel: tpu_custom_call.1
= control target key start
LH: loop header
LB: loop body
LE: loop exit
PB: predicated region body
PF: predicated region fallthrough
CT: control target
= control target key end

     0   :  { %s870_s15 = smov 0   ;;  %s872_s16 = smov 0   ;;  %s1001_s0 = inlined_call_operand.vmem [shape: f32[2,8,16], index: 0, kind: input, shape index: {}]   ;;  %s1002_s1 = inlined_call_operand.vmem [shape: f32[2,8,16], index: 1, kind: input, shape index: {}]   ;;  %s1003_s2 = inlined_call_operand.vmem [shape: f32[16,192], index: 2, kind: input, shape index: {}]   ;;  %s1004_s3 = inlined_call_operand.vmem [shape: f32[12,8,8], index: 3, kind: input, shape index: {}]   ;;  %s1005_s4 = inlined_call_operand.vmem [shape: f32[2,12,8,8], index: 4, kind: output, shape index: {}]  }
   0x1   :  { %s874_s17 = smov 0  }
   0x2 LB: > { %s26_s18 = sadd.s32 1, %s831_s16  ;;  %p721_p0 = scmp.ge.s32.totalorder %s835_s17, 1  ;;  %s835_s17 = sphi %s874_s17, %s14_s17   ;;  %s831_s16 = sphi %s872_s16, %s1007_s16   ;;  %s827_s15 = sphi %s870_s15, %s1006_s15  }
   0x3   : > { %p27_p1 = scmp.ge.s32.totalorder %s26_s18, 2  ;;  %p217_p2 = scmp.lt.s32.totalorder %s835_s17, 3 }
   0x5   : > { %s1009_s18 = smov (%p27_p1, %s26_s18), 0  ;;  %p218_p3 = pnand %p721_p0, %p217_p2 }
   0x6   : > { %v300_v0 = vld [vmem:[%s1003_s2 + $0x8] sm:$0xff] (!%p218_p3)  ;;  %v302_v1 = vld [vmem:[%s1003_s2 + $0x18] sm:$0xff] (!%p218_p3)  ;;  %v299_v2 = vld [vmem:[%s1003_s2] sm:$0xff] (!%p218_p3)  ;;  %p265_p4 = scmp.lt.s32.totalorder (!%p218_p3), %s827_s15, 1  ;;  %v837_v5 = vmov (!%p218_p3), 0.0   ;;  %vm303_vm0 = vcmask (!%p218_p3), 130048  }
   0x7   : > { %221 = sbr.rel (%p218_p3) target bundleno = 577 (0x241), region = 36  ;;  %v774_v3 = vpack.c.bf16 (!%p218_p3), %v302_v1, %v300_v0  ;;  %v301_v4 = vld [vmem:[%s1003_s2 + $0x10] sm:$0xff] (!%p218_p3)  ;;  %371 = vmatprep.mubr.f32.mxu0 (!%p218_p3), %v837_v5  ;;  %s838_s8 = smov (!%p218_p3), 32   ;;  %v557_v21 = vld [vmem:[%s1004_s3 + $0x28] sm:$0xff] (!%p218_p3)  ;;  %v556_v22 = vld [vmem:[%s1004_s3 + $0x20] sm:$0xff] (!%p218_p3)  ;;  %vm576_vm1 = vcmask (!%p218_p3), 64512  }
   0x8   : > { %v776_v6 = vpack.c.bf16 (!%p218_p3), %v301_v4, %v299_v2  ;;  %s839_s9 = smov (!%p218_p3), 64   ;;  %s840_s10 = smov (!%p218_p3), 16   ;;  %v553_v27 = vld [vmem:[%s1004_s3 + $0x8] sm:$0xff] (!%p218_p3)  ;;  %v559_v28 = vld [vmem:[%s1004_s3 + $0x38] sm:$0xff] (!%p218_p3)  ;;  %v552_v29 = vld [vmem:[%s1004_s3] sm:$0xff] (!%p218_p3) }
   0x9   : > { %775 = vmatprep.subr.bf16.mxu0 (!%p218_p3), %v774_v3  ;;  %s841_s11 = smov (!%p218_p3), 48   ;;  %s842_s12 = smov (!%p218_p3), 112   ;;  %v558_v30 = vld [vmem:[%s1004_s3 + $0x30] sm:$0xff] (!%p218_p3)  ;;  %v561_v39 = vld [vmem:[%s1004_s3 + $0x48] sm:$0xff] (!%p218_p3)  ;;  %v560_v40 = vld [vmem:[%s1004_s3 + $0x40] sm:$0xff] (!%p218_p3) }
   0xa   : > { %777 = vmatpush1.bf16.msra.mxu0 (!%p218_p3), %v776_v6  ;;  %s843_s13 = smov (!%p218_p3), 96   ;;  %s844_s14 = smov (!%p218_p3), 80   ;;  %v555_v45 = vld [vmem:[%s1004_s3 + $0x18] sm:$0xff] (!%p218_p3)  ;;  %v554_v47 = vld [vmem:[%s1004_s3 + $0x10] sm:$0xff] (!%p218_p3) }
   0xb   : > { %v563_v46 = vld [vmem:[%s1004_s3 + $0x58] sm:$0xff] (!%p218_p3)  ;;  %v562_v48 = vld [vmem:[%s1004_s3 + $0x50] sm:$0xff] (!%p218_p3) }
   0xe   : > { %s1011_s15 = smov (!%p265_p4, %s827_s15), 1 }
   0xf   : > { %s722_s27 = sshll.u32 %s1011_s15, 3  ;;  %s780_s19 = smul.u32 96, %s1011_s15 }
  0x10   : > { %s271_s30 = scalar_lea.vmem %s1001_s0, %s722_s27  ;;  %s278_s7 = scalar_lea.vmem %s1002_s1, %s722_s27 }
  0x11   : > { %v297_v7 = vld [vmem:[%s271_s30] sm:$0xff]  ;;  %s936_s26 = scalar_lea.vmem %s1005_s4, %s780_s19 }
  0x12   : > { %725 = vmatmul.mubr.msk.f32.vlgmr.msra.gmra.mrb[0].mxu0 %vm303_vm0, %v297_v7  ;;  %v298_v8 = vld [vmem:[%s278_s7] sm:$0xff] }
  0x13   : > { %778 = vmatprep.subr.msk.mxu1 %vm303_vm0, %v298_v8  ;;  %754 = vmatprep.subr.msk.mxu0 %vm303_vm0, %v298_v8 }
  0x14   : > { %779 = vmatpush3.xpose.msk.msra.mxu1 %vm303_vm0, %v298_v8  ;;  %755 = vmatpush3.xpose.msk.msra.mxu0 %vm303_vm0, %v298_v8 }
  0xe5   : > { %v373_v9 = vpop.f32.mrb[0].mxu0 }
  0xe6   : > { %389 = vrot.lane.b32.xlu1 %v373_v9, %s838_s8  ;;  %385 = vrot.lane.b32.xlu0 %v373_v9, %s839_s9  ;;  %v375_v10 = vpop.f32.mrb[1].mxu0 }
  0xe7   : > { %756 = vmatprep.mubr.msk.f32.mxu0 %vm303_vm0, %v373_v9 }
  0xea   : > { %391 = vrot.lane.b32.xlu1 %v373_v9, %s840_s10  ;;  %387 = vrot.lane.b32.xlu0 %v373_v9, %s841_s11 }
  0xee   : > { %379 = vrot.lane.b32.xlu0 %v373_v9, %s842_s12  ;;  %394 = vrot.lane.b32.xlu1 %v375_v10, %s842_s12 }
  0xf2   : > { %381 = vrot.lane.b32.xlu0 %v373_v9, %s843_s13  ;;  %396 = vrot.lane.b32.xlu1 %v375_v10, %s843_s13 }
  0xf6   : > { %383 = vrot.lane.b32.xlu0 %v373_v9, %s844_s14  ;;  %398 = vrot.lane.b32.xlu1 %v375_v10, %s844_s14 }
 0x158   : > { %v390_v11 = vpop.permute.xlu1 %389  ;;  %v386_v12 = vpop.permute.xlu0 %385 }
 0x159   : > { %762 = vmatprep.mubr.msk.f32.mxu1 %vm303_vm0, %v386_v12 }
 0x15c   : > { %v392_v13 = vpop.permute.xlu1 %391  ;;  %v388_v14 = vpop.permute.xlu0 %387 }
 0x15d   : > { %763 = vmatmul.mubr.msk.f32.vlgmr.msra.gmra.mrb[0].mxu1 %vm303_vm0, %v388_v14 }
 0x15e   : > { %765 = vmatprep.mubr.msk.f32.mxu1 %vm303_vm0, %v390_v11 }
 0x160   : > { %v380_v15 = vpop.permute.xlu0 %379  ;;  %v395_v16 = vpop.permute.xlu1 %394 }
 0x161   : > { %757 = vmatmul.mubr.msk.f32.vlgmr.msra.gmra.mrb[2].mxu0 %vm303_vm0, %v380_v15  ;;  %766 = vmatmul.mubr.msk.f32.gmra.mrb[2].mxu1 %vm303_vm0, %v392_v13 }
 0x162   : > { %768 = vmatprep.mubr.msk.f32.mxu1 %vm303_vm0, %v375_v10 }
 0x164   : > { %v382_v17 = vpop.permute.xlu0 %381  ;;  %v397_v18 = vpop.permute.xlu1 %396 }
 0x165   : > { %759 = vmatprep.mubr.msk.f32.mxu0 %vm303_vm0, %v382_v17  ;;  %769 = vmatmul.mubr.msk.f32.gmra.mrb[4].mxu1 %vm303_vm0, %v395_v16 }
 0x166   : > { %771 = vmatprep.mubr.msk.f32.mxu1 %vm303_vm0, %v397_v18 }
 0x168   : > { %v384_v19 = vpop.permute.xlu0 %383  ;;  %v399_v20 = vpop.permute.xlu1 %398 }
 0x169   : > { %760 = vmatmul.mubr.msk.f32.gmra.mrb[4].mxu0 %vm303_vm0, %v384_v19  ;;  %772 = vmatmul.mubr.msk.f32.gmra.mrb[6].mxu1 %vm303_vm0, %v399_v20 }
 0x230   : > { %v764_v23 = vpop.f32.mrb[0].mxu1 }
 0x231   : > { %v569_v24 = vadd.f32 %v764_v23, %v557_v21  ;;  %v513_v25 = vpop.f32.mrb[1].mxu1 }
 0x232   : > { %v568_v26 = vadd.f32 %v556_v22, %v513_v25 }
 0x233   : > { %582 = vst.msk [vmem:[%s936_s26 + $0x28] sm:$0xff] %vm576_vm1, %v569_v24 }
 0x234   : > { %581 = vst.msk [vmem:[%s936_s26 + $0x20] sm:$0xff] %vm576_vm1, %v568_v26  ;;  %v758_v31 = vpop.f32.mrb[2].mxu0  ;;  %v767_v32 = vpop.f32.mrb[2].mxu1 }
 0x235   : > { %v565_v33 = vadd.f32 %v758_v31, %v553_v27  ;;  %v571_v34 = vadd.f32 %v767_v32, %v559_v28  ;;  %v493_v35 = vpop.f32.mrb[3].mxu0  ;;  %v523_v36 = vpop.f32.mrb[3].mxu1 }
 0x236   : > { %v564_v37 = vadd.f32 %v552_v29, %v493_v35  ;;  %v570_v38 = vadd.f32 %v558_v30, %v523_v36 }
 0x237   : > { %578 = vst.msk [vmem:[%s936_s26 + $0x8] sm:$0xff] %vm576_vm1, %v565_v33  ;;  %584 = vst.msk [vmem:[%s936_s26 + $0x38] sm:$0xff] %vm576_vm1, %v571_v34 }
 0x238   : > { %577 = vst.msk [vmem:[%s936_s26] sm:$0xff] %vm576_vm1, %v564_v37  ;;  %583 = vst.msk [vmem:[%s936_s26 + $0x30] sm:$0xff] %vm576_vm1, %v570_v38  ;;  %v770_v41 = vpop.f32.mrb[4].mxu1 }
 0x239   : > { %v573_v42 = vadd.f32 %v770_v41, %v561_v39  ;;  %v533_v43 = vpop.f32.mrb[5].mxu1 }
 0x23a   : > { %v572_v44 = vadd.f32 %v560_v40, %v533_v43 }
 0x23b   : > { %586 = vst.msk [vmem:[%s936_s26 + $0x48] sm:$0xff] %vm576_vm1, %v573_v42 }
 0x23c   : > { %585 = vst.msk [vmem:[%s936_s26 + $0x40] sm:$0xff] %vm576_vm1, %v572_v44  ;;  %v761_v49 = vpop.f32.mrb[4].mxu0  ;;  %v773_v50 = vpop.f32.mrb[6].mxu1 }
 0x23d   : > { %v567_v51 = vadd.f32 %v761_v49, %v555_v45  ;;  %v575_v52 = vadd.f32 %v773_v50, %v563_v46  ;;  %v503_v53 = vpop.f32.mrb[5].mxu0  ;;  %v543_v54 = vpop.f32.mrb[7].mxu1 }
 0x23e   : > { %v566_v55 = vadd.f32 %v554_v47, %v503_v53  ;;  %v574_v56 = vadd.f32 %v562_v48, %v543_v54 }
 0x23f   : > { %580 = vst.msk [vmem:[%s936_s26 + $0x18] sm:$0xff] %vm576_vm1, %v567_v51  ;;  %588 = vst.msk [vmem:[%s936_s26 + $0x58] sm:$0xff] %vm576_vm1, %v575_v52 }
 0x240   : > { %579 = vst.msk [vmem:[%s936_s26 + $0x10] sm:$0xff] %vm576_vm1, %v566_v55  ;;  %587 = vst.msk [vmem:[%s936_s26 + $0x50] sm:$0xff] %vm576_vm1, %v574_v56 }
 0x241 PF: > { %s14_s17 = sadd.s32 1, %s835_s17   ;;  %s1006_s15 = smov %s831_s16 }
 0x242   : > { %p11_p5 = scmp.ge.s32.totalorder %s14_s17, 4   ;;  %s1007_s16 = smov %s1009_s18 }
 0x244   :  { %13 = sbr.rel (!%p11_p5) target bundleno = 2 (0x2), region = 72 }

</bundles_post_ra>
